<compile_context>
chip_gen: v5e
topology: v5e:2x2
jax: 0.10.0
libtpu: 0.0.40
codegen_flags: <defaults>
</compile_context>

<pallas_src>
import numpy as np

import jax
import jax.numpy as jnp
from jax import lax
from jax.experimental import pallas as pl
from jax.experimental.pallas import tpu as pltpu


# ----------------------------------------------------------------------------- helpers
def _layer_norm(x, gamma, beta, eps=1e-6):
    # PyTorch LayerNorm: biased variance over the last axis.
    mean = jnp.mean(x, axis=-1, keepdims=True)
    var = jnp.mean(jnp.square(x - mean), axis=-1, keepdims=True)
    return (x - mean) * lax.rsqrt(var + eps) * gamma + beta


# ----------------------------------------------------------------------------- kernel
def encoder_kernel(x_ref, pre_ref, wq_ref, wk_ref, wv_ref, wo_ref,
                   w1_ref, b1_ref, w2_ref, misc_ref, o_ref):
    # x_ref   : (1, S, D)            input activations (only consumed at l == 0)
    # pre_ref : (S+2, D)             rows [0:S]=pos table, [S]=ln0 gamma, [S+1]=ln0 beta
    # wq/wk   : (1, H, D, dk)        head-major Q/K projections (wq pre-scaled by 1/sqrt(dk))
    # wv_ref  : (1, H, D, dv)
    # wo_ref  : (1, H, dv, D)
    # w1_ref  : (1, D, d_inner)      FFN
    # b1_ref  : (1, 1, d_inner)
    # w2_ref  : (1, d_inner, D)
    # misc_ref: (1, 5, D)            rows: ln1_g, ln1_b, ln2_g, ln2_b, b2
    # o_ref   : (1, S, D)            output block; also the carried activation across l
    S = x_ref.shape[1]
    n_head = wq_ref.shape[1]
    l = pl.program_id(1)

    # ---- prelude (positional encoding + first LayerNorm), only once per batch row ----
    @pl.when(l == 0)
    def _():
        pos = pre_ref[0:S]
        g0 = pre_ref[S:S + 1]
        b0 = pre_ref[S + 1:S + 2]
        # scale_emb=False -> no d_model**0.5 scaling.
        # TODO(synk): dropout has no deterministic forward semantics; treated as eval-mode identity.
        o_ref[0] = _layer_norm(x_ref[0] + pos, g0, b0)

    x = o_ref[0]                                   # carried activation [S, D]
    residual = x

    # ---- multi-head self-attention (head-batched, leading batch dim = H) -------------
    xh = jnp.broadcast_to(x, (n_head,) + x.shape)  # [H, S, D]
    # 1/sqrt(d_k) already folded into wq.
    q = jnp.einsum('hsd,hde->hse', xh, wq_ref[0], preferred_element_type=jnp.float32)
    k = jnp.einsum('hsd,hde->hse', xh, wk_ref[0], preferred_element_type=jnp.float32)
    v = jnp.einsum('hsd,hde->hse', xh, wv_ref[0], preferred_element_type=jnp.float32)

    s = jnp.einsum('hqe,hke->hqk', q, k, preferred_element_type=jnp.float32)  # [H, S, S]
    s = s - jnp.max(s, axis=-1, keepdims=True)
    p = jnp.exp(s)
    p = p * pl.reciprocal(jnp.sum(p, axis=-1, keepdims=True), approx=True)

    o = jnp.einsum('hqk,hkv->hqv', p, v, preferred_element_type=jnp.float32)        # [H, S, dv]
    proj = jnp.einsum('hqv,hvd->hqd', o, wo_ref[0], preferred_element_type=jnp.float32)  # [H, S, D]
    # sum over heads == concat(heads) @ W_o, but with full-tile VALU adds (no lane concat)
    attn_out = proj[0]
    for h in range(1, n_head):
        attn_out = attn_out + proj[h]

    ln1_g = misc_ref[0, 0:1]
    ln1_b = misc_ref[0, 1:2]
    ln2_g = misc_ref[0, 2:3]
    ln2_b = misc_ref[0, 3:4]
    bias2 = misc_ref[0, 4:5]

    x = _layer_norm(attn_out + residual, ln1_g, ln1_b)

    # ---- position-wise feed-forward ---------------------------------------------------
    residual = x
    h1 = jnp.dot(x, w1_ref[0], preferred_element_type=jnp.float32) + b1_ref[0]
    h1 = jnp.maximum(h1, 0.0)                                          # ReLU
    y = jnp.dot(h1, w2_ref[0], preferred_element_type=jnp.float32) + bias2
    x = _layer_norm(y + residual, ln2_g, ln2_b)

    # ---- Encoder's post-layer tanh -----------------------------------------------------
    o_ref[0] = jnp.tanh(x)


# ----------------------------------------------------------------------------- wrapper
def run_encoder(x, stacked):
    B, S, D = x.shape
    L = stacked["wq"].shape[0]
    pre = stacked["prelude"]

    def wspec(arr):
        nd = arr.ndim
        blk = (1,) + arr.shape[1:]
        return pl.BlockSpec(blk, lambda b, l, _nd=nd: (l,) + (0,) * (_nd - 1))

    weights = [stacked["wq"], stacked["wk"], stacked["wv"], stacked["wo"],
               stacked["w1"], stacked["b1"], stacked["w2"], stacked["misc"]]

    return pl.pallas_call(
        encoder_kernel,
        out_shape=jax.ShapeDtypeStruct((B, S, D), jnp.float32),
        grid=(B, L),
        in_specs=[pl.BlockSpec((1, S, D), lambda b, l: (b, 0, 0)),
                  pl.BlockSpec(pre.shape, lambda b, l: (0, 0))]
                 + [wspec(w) for w in weights],
        out_specs=pl.BlockSpec((1, S, D), lambda b, l: (b, 0, 0)),
        compiler_params=pltpu.CompilerParams(
            dimension_semantics=("parallel", "arbitrary"),
            vmem_limit_bytes=64 * 1024 * 1024),
    )(x, pre, *weights)


# ----------------------------------------------------------------------------- params
def sinusoid_table(n_position, d_hid):
    pos = np.arange(n_position, dtype=np.float64)[:, None]
    hid = np.arange(d_hid)[None, :]
    angle = pos / np.power(10000.0, 2.0 * (hid // 2) / d_hid)
    table = np.zeros((n_position, d_hid), dtype=np.float32)
    table[:, 0::2] = np.sin(angle[:, 0::2])
    table[:, 1::2] = np.cos(angle[:, 1::2])
    return jnp.asarray(table)


def init_params(key, *, n_layers, d_model, d_inner, n_head, d_k, d_v, n_position, seq_len):
    def linear_w(k, fan_in, fan_out):
        bound = 1.0 / np.sqrt(fan_in)
        return jax.random.uniform(k, (fan_in, fan_out), jnp.float32, -bound, bound)

    def bias(k, fan_in, fan_out):
        bound = 1.0 / np.sqrt(fan_in)
        return jax.random.uniform(k, (1, fan_out), jnp.float32, -bound, bound)

    layers = []
    for i in range(n_layers):
        ks = jax.random.split(jax.random.fold_in(key, i), 8)
        layers.append(dict(
            wq=linear_w(ks[0], d_model, n_head * d_k),
            wk=linear_w(ks[1], d_model, n_head * d_k),
            wv=linear_w(ks[2], d_model, n_head * d_v),
            wo=linear_w(ks[3], n_head * d_v, d_model),
            ln1_g=jnp.ones((1, d_model), jnp.float32),
            ln1_b=jnp.zeros((1, d_model), jnp.float32),
            w1=linear_w(ks[4], d_model, d_inner),
            b1=bias(ks[5], d_model, d_inner),
            w2=linear_w(ks[6], d_inner, d_model),
            b2=bias(ks[7], d_inner, d_model),
            ln2_g=jnp.ones((1, d_model), jnp.float32),
            ln2_b=jnp.zeros((1, d_model), jnp.float32),
        ))
    return dict(
        pos=sinusoid_table(n_position, d_model)[:seq_len],   # [S, D]
        ln0_g=jnp.ones((1, d_model), jnp.float32),
        ln0_b=jnp.zeros((1, d_model), jnp.float32),
        layers=layers,
    )


def stack_params(params, *, n_head, d_k, d_v):
    """Stack per-layer params over L and convert QKV/O weights to head-major layout."""
    layers = params["layers"]
    D = params["ln0_g"].shape[-1]
    temp = d_k ** 0.5

    def stack(fn):
        return jnp.stack([fn(lp) for lp in layers], axis=0)

    return dict(
        prelude=jnp.concatenate([params["pos"], params["ln0_g"], params["ln0_b"]], axis=0),
        # fold 1/sqrt(d_k) into wq (host-side, once)
        wq=stack(lambda lp: (lp["wq"] / temp).reshape(D, n_head, d_k).transpose(1, 0, 2)),
        wk=stack(lambda lp: lp["wk"].reshape(D, n_head, d_k).transpose(1, 0, 2)),
        wv=stack(lambda lp: lp["wv"].reshape(D, n_head, d_v).transpose(1, 0, 2)),
        wo=stack(lambda lp: lp["wo"].reshape(n_head, d_v, D)),
        w1=stack(lambda lp: lp["w1"]),
        b1=stack(lambda lp: lp["b1"]),
        w2=stack(lambda lp: lp["w2"]),
        misc=stack(lambda lp: jnp.concatenate(
            [lp["ln1_g"], lp["ln1_b"], lp["ln2_g"], lp["ln2_b"], lp["b2"]], axis=0)),
    )


# ----------------------------------------------------------------------------- reference
def reference_encoder(x, params, *, n_head, d_k, d_v):
    with jax.default_matmul_precision("highest"):
        B, S, D = x.shape
        x = x + params["pos"][None]
        x = _layer_norm(x, params["ln0_g"], params["ln0_b"])
        for lp in params["layers"]:
            res = x
            q = (x @ lp["wq"]).reshape(B, S, n_head, d_k).transpose(0, 2, 1, 3)
            k = (x @ lp["wk"]).reshape(B, S, n_head, d_k).transpose(0, 2, 1, 3)
            v = (x @ lp["wv"]).reshape(B, S, n_head, d_v).transpose(0, 2, 1, 3)
            s = jnp.einsum("bhqd,bhkd->bhqk", q / (d_k ** 0.5), k)
            p = jax.nn.softmax(s, axis=-1)
            o = jnp.einsum("bhqk,bhkd->bhqd", p, v).transpose(0, 2, 1, 3).reshape(B, S, -1)
            x = _layer_norm(o @ lp["wo"] + res, lp["ln1_g"], lp["ln1_b"])
            res = x
            h = jax.nn.relu(x @ lp["w1"] + lp["b1"])
            x = _layer_norm(h @ lp["w2"] + lp["b2"] + res, lp["ln2_g"], lp["ln2_b"])
            x = jnp.tanh(x)
        return x


# ----------------------------------------------------------------------------- main
if __name__ == "__main__":
    n_layers, d_model, d_inner, n_head, d_k, d_v = 2, 32, 64, 4, 8, 8
    B, S, n_position = 2, 8, 200

    key = jax.random.PRNGKey(0)
    kx, kp = jax.random.split(key)
    x = jax.random.normal(kx, (B, S, d_model), dtype=jnp.float32)
    params = init_params(kp, n_layers=n_layers, d_model=d_model, d_inner=d_inner,
                         n_head=n_head, d_k=d_k, d_v=d_v,
                         n_position=n_position, seq_len=S)
    stacked = stack_params(params, n_head=n_head, d_k=d_k, d_v=d_v)

    out = run_encoder(x, stacked)
    out = jax.block_until_ready(out)

    ref = reference_encoder(x, params, n_head=n_head, d_k=d_k, d_v=d_v)
    np.testing.assert_allclose(np.asarray(out), np.asarray(ref), rtol=2e-3, atol=2e-3)

    print("KERNEL_OK")
</pallas_src>

<mosaic_0001>
module attributes {stable_mosaic.version = 11 : i64} {
  func.func @encoder_kernel(%arg0: i32, %arg1: i32, %arg2: memref<1x8x32xf32, #tpu.memory_space<vmem>>, %arg3: memref<10x32xf32, #tpu.memory_space<vmem>>, %arg4: memref<1x4x32x8xf32, #tpu.memory_space<vmem>>, %arg5: memref<1x4x32x8xf32, #tpu.memory_space<vmem>>, %arg6: memref<1x4x32x8xf32, #tpu.memory_space<vmem>>, %arg7: memref<1x4x8x32xf32, #tpu.memory_space<vmem>>, %arg8: memref<1x32x64xf32, #tpu.memory_space<vmem>>, %arg9: memref<1x1x64xf32, #tpu.memory_space<vmem>>, %arg10: memref<1x64x32xf32, #tpu.memory_space<vmem>>, %arg11: memref<1x5x32xf32, #tpu.memory_space<vmem>>, %arg12: memref<1x8x32xf32, #tpu.memory_space<vmem>>) attributes {dimension_semantics = [#tpu.dimension_semantics<parallel>, #tpu.dimension_semantics<arbitrary>], iteration_bounds = array<i64: 2, 2>, scalar_prefetch = 0 : i64, scratch_operands = 0 : i64, tpu.core_type = #tpu.core_type<tc>, window_params = [{transform_indices = @transform_0, window_bounds = array<i64: 1, 8, 32>}, {pipeline_mode = #tpu.pipeline_mode<synchronous>, transform_indices = @transform_1, window_bounds = array<i64: 10, 32>}, {transform_indices = @transform_2, window_bounds = array<i64: 1, 4, 32, 8>}, {transform_indices = @transform_3, window_bounds = array<i64: 1, 4, 32, 8>}, {transform_indices = @transform_4, window_bounds = array<i64: 1, 4, 32, 8>}, {transform_indices = @transform_5, window_bounds = array<i64: 1, 4, 8, 32>}, {transform_indices = @transform_6, window_bounds = array<i64: 1, 32, 64>}, {transform_indices = @transform_7, window_bounds = array<i64: 1, 1, 64>}, {transform_indices = @transform_8, window_bounds = array<i64: 1, 64, 32>}, {transform_indices = @transform_9, window_bounds = array<i64: 1, 5, 32>}, {transform_indices = @transform_10, window_bounds = array<i64: 1, 8, 32>}]} {
    %c0_i32 = arith.constant 0 : i32
    %0 = arith.cmpi eq, %arg1, %c0_i32 : i32
    %1 = arith.extui %0 : i1 to i32
    %c0_i32_0 = arith.constant 0 : i32
    %2 = arith.cmpi ne, %1, %c0_i32_0 : i32
    scf.if %2 {
      %c0_62 = arith.constant 0 : index
      %c0_63 = arith.constant 0 : index
      %116 = vector.load %arg3[%c0_62, %c0_63] : memref<10x32xf32, #tpu.memory_space<vmem>>, vector<8x32xf32>
      %c8 = arith.constant 8 : index
      %c0_64 = arith.constant 0 : index
      %117 = vector.load %arg3[%c8, %c0_64] : memref<10x32xf32, #tpu.memory_space<vmem>>, vector<1x32xf32>
      %c9 = arith.constant 9 : index
      %c0_65 = arith.constant 0 : index
      %118 = vector.load %arg3[%c9, %c0_65] : memref<10x32xf32, #tpu.memory_space<vmem>>, vector<1x32xf32>
      %c0_66 = arith.constant 0 : index
      %c0_67 = arith.constant 0 : index
      %c0_68 = arith.constant 0 : index
      %119 = vector.load %arg2[%c0_66, %c0_67, %c0_68] : memref<1x8x32xf32, #tpu.memory_space<vmem>>, vector<1x8x32xf32>
      %120 = vector.shape_cast %119 : vector<1x8x32xf32> to vector<8x32xf32>
      %121 = arith.addf %120, %116 : vector<8x32xf32>
      %cst_69 = arith.constant dense<0.000000e+00> : vector<8xf32>
      %122 = vector.multi_reduction <add>, %121, %cst_69 [1] : vector<8x32xf32> to vector<8xf32>
      %123 = vector.shape_cast %122 : vector<8xf32> to vector<8x1xf32>
      %cst_70 = arith.constant 3.200000e+01 : f32
      %124 = vector.broadcast %cst_70 : f32 to vector<8x1xf32>
      %125 = arith.divf %123, %124 : vector<8x1xf32>
      %126 = vector.broadcast %125 : vector<8x1xf32> to vector<8x32xf32>
      %127 = arith.subf %121, %126 : vector<8x32xf32>
      %128 = arith.mulf %127, %127 : vector<8x32xf32>
      %cst_71 = arith.constant dense<0.000000e+00> : vector<8xf32>
      %129 = vector.multi_reduction <add>, %128, %cst_71 [1] : vector<8x32xf32> to vector<8xf32>
      %130 = vector.shape_cast %129 : vector<8xf32> to vector<8x1xf32>
      %cst_72 = arith.constant 3.200000e+01 : f32
      %131 = vector.broadcast %cst_72 : f32 to vector<8x1xf32>
      %132 = arith.divf %130, %131 : vector<8x1xf32>
      %133 = vector.broadcast %125 : vector<8x1xf32> to vector<8x32xf32>
      %134 = arith.subf %121, %133 : vector<8x32xf32>
      %cst_73 = arith.constant 9.99999997E-7 : f32
      %135 = vector.broadcast %cst_73 : f32 to vector<8x1xf32>
      %136 = arith.addf %132, %135 : vector<8x1xf32>
      %137 = math.rsqrt %136 : vector<8x1xf32>
      %138 = vector.broadcast %137 : vector<8x1xf32> to vector<8x32xf32>
      %139 = arith.mulf %134, %138 : vector<8x32xf32>
      %140 = vector.broadcast %117 : vector<1x32xf32> to vector<8x32xf32>
      %141 = arith.mulf %139, %140 : vector<8x32xf32>
      %142 = vector.broadcast %118 : vector<1x32xf32> to vector<8x32xf32>
      %143 = arith.addf %141, %142 : vector<8x32xf32>
      %c0_74 = arith.constant 0 : index
      %c0_75 = arith.constant 0 : index
      %c0_76 = arith.constant 0 : index
      %144 = vector.load %arg12[%c0_74, %c0_75, %c0_76] : memref<1x8x32xf32, #tpu.memory_space<vmem>>, vector<1x8x32xf32>
      %145 = vector.shape_cast %144 : vector<1x8x32xf32> to vector<8x32xf32>
      %146 = vector.shape_cast %143 : vector<8x32xf32> to vector<1x8x32xf32>
      tpu.vector_store %arg12[%c0_74, %c0_75, %c0_76], %146 {strides = array<i32>} : memref<1x8x32xf32, #tpu.memory_space<vmem>>, vector<1x8x32xf32>,
    } else {
    }
    %c0 = arith.constant 0 : index
    %c0_1 = arith.constant 0 : index
    %c0_2 = arith.constant 0 : index
    %3 = vector.load %arg12[%c0, %c0_1, %c0_2] : memref<1x8x32xf32, #tpu.memory_space<vmem>>, vector<1x8x32xf32>
    %4 = vector.shape_cast %3 : vector<1x8x32xf32> to vector<8x32xf32>
    %5 = vector.shape_cast %4 : vector<8x32xf32> to vector<1x8x32xf32>
    %6 = vector.broadcast %5 : vector<1x8x32xf32> to vector<4x8x32xf32>
    %c0_3 = arith.constant 0 : index
    %c0_4 = arith.constant 0 : index
    %c0_5 = arith.constant 0 : index
    %c0_6 = arith.constant 0 : index
    %7 = vector.load %arg4[%c0_3, %c0_4, %c0_5, %c0_6] : memref<1x4x32x8xf32, #tpu.memory_space<vmem>>, vector<1x4x32x8xf32>
    %8 = vector.shape_cast %7 : vector<1x4x32x8xf32> to vector<4x32x8xf32>
    "tpu.trace_start"() <{level = 10 : i32, message = "hsd,hde->hse"}> : () -> ()
    %cst = arith.constant dense<0.000000e+00> : vector<4x8x8xf32>
    %9 = tpu.matmul %6, %8, %cst {dimension_numbers = #tpu.dot_dimension_numbers<[2], [1], [1], [2], [0, 0, 0, 1, 1, 2], [0], [0]>} : vector<4x8x32xf32>, vector<4x32x8xf32>, vector<4x8x8xf32> -> vector<4x8x8xf32>
    "tpu.trace_stop"() : () -> ()
    %c0_7 = arith.constant 0 : index
    %c0_8 = arith.constant 0 : index
    %c0_9 = arith.constant 0 : index
    %c0_10 = arith.constant 0 : index
    %10 = vector.load %arg5[%c0_7, %c0_8, %c0_9, %c0_10] : memref<1x4x32x8xf32, #tpu.memory_space<vmem>>, vector<1x4x32x8xf32>
    %11 = vector.shape_cast %10 : vector<1x4x32x8xf32> to vector<4x32x8xf32>
    "tpu.trace_start"() <{level = 10 : i32, message = "hsd,hde->hse"}> : () -> ()
    %cst_11 = arith.constant dense<0.000000e+00> : vector<4x8x8xf32>
    %12 = tpu.matmul %6, %11, %cst_11 {dimension_numbers = #tpu.dot_dimension_numbers<[2], [1], [1], [2], [0, 0, 0, 1, 1, 2], [0], [0]>} : vector<4x8x32xf32>, vector<4x32x8xf32>, vector<4x8x8xf32> -> vector<4x8x8xf32>
    "tpu.trace_stop"() : () -> ()
    %c0_12 = arith.constant 0 : index
    %c0_13 = arith.constant 0 : index
    %c0_14 = arith.constant 0 : index
    %c0_15 = arith.constant 0 : index
    %13 = vector.load %arg6[%c0_12, %c0_13, %c0_14, %c0_15] : memref<1x4x32x8xf32, #tpu.memory_space<vmem>>, vector<1x4x32x8xf32>
    %14 = vector.shape_cast %13 : vector<1x4x32x8xf32> to vector<4x32x8xf32>
    "tpu.trace_start"() <{level = 10 : i32, message = "hsd,hde->hse"}> : () -> ()
    %cst_16 = arith.constant dense<0.000000e+00> : vector<4x8x8xf32>
    %15 = tpu.matmul %6, %14, %cst_16 {dimension_numbers = #tpu.dot_dimension_numbers<[2], [1], [1], [2], [0, 0, 0, 1, 1, 2], [0], [0]>} : vector<4x8x32xf32>, vector<4x32x8xf32>, vector<4x8x8xf32> -> vector<4x8x8xf32>
    "tpu.trace_stop"() : () -> ()
    "tpu.trace_start"() <{level = 10 : i32, message = "hqe,hke->hqk"}> : () -> ()
    %cst_17 = arith.constant dense<0.000000e+00> : vector<4x8x8xf32>
    %16 = tpu.matmul %9, %12, %cst_17 {dimension_numbers = #tpu.dot_dimension_numbers<[2], [2], [1], [1], [0, 0, 0, 1, 1, 1], [0], [0]>} : vector<4x8x8xf32>, vector<4x8x8xf32>, vector<4x8x8xf32> -> vector<4x8x8xf32>
    "tpu.trace_stop"() : () -> ()
    %cst_18 = arith.constant dense<0xFF800000> : vector<4x8xf32>
    %17 = vector.multi_reduction <maximumf>, %16, %cst_18 [2] : vector<4x8x8xf32> to vector<4x8xf32>
    %18 = vector.shape_cast %17 : vector<4x8xf32> to vector<4x8x1xf32>
    %19 = vector.broadcast %18 : vector<4x8x1xf32> to vector<4x8x8xf32>
    %20 = arith.subf %16, %19 : vector<4x8x8xf32>
    %21 = math.exp %20 : vector<4x8x8xf32>
    %cst_19 = arith.constant dense<0.000000e+00> : vector<4x8xf32>
    %22 = vector.multi_reduction <add>, %21, %cst_19 [2] : vector<4x8x8xf32> to vector<4x8xf32>
    %23 = vector.shape_cast %22 : vector<4x8xf32> to vector<4x8x1xf32>
    %24 = tpu.reciprocal %23 {approx = true} : vector<4x8x1xf32> -> vector<4x8x1xf32>
    %25 = vector.broadcast %24 : vector<4x8x1xf32> to vector<4x8x8xf32>
    %26 = arith.mulf %21, %25 : vector<4x8x8xf32>
    "tpu.trace_start"() <{level = 10 : i32, message = "hqk,hkv->hqv"}> : () -> ()
    %cst_20 = arith.constant dense<0.000000e+00> : vector<4x8x8xf32>
    %27 = tpu.matmul %26, %15, %cst_20 {dimension_numbers = #tpu.dot_dimension_numbers<[2], [1], [1], [2], [0, 0, 0, 1, 1, 2], [0], [0]>} : vector<4x8x8xf32>, vector<4x8x8xf32>, vector<4x8x8xf32> -> vector<4x8x8xf32>
    "tpu.trace_stop"() : () -> ()
    %c0_21 = arith.constant 0 : index
    %c0_22 = arith.constant 0 : index
    %c0_23 = arith.constant 0 : index
    %c0_24 = arith.constant 0 : index
    %28 = vector.load %arg7[%c0_21, %c0_22, %c0_23, %c0_24] : memref<1x4x8x32xf32, #tpu.memory_space<vmem>>, vector<1x4x8x32xf32>
    %29 = vector.shape_cast %28 : vector<1x4x8x32xf32> to vector<4x8x32xf32>
    "tpu.trace_start"() <{level = 10 : i32, message = "hqv,hvd->hqd"}> : () -> ()
    %cst_25 = arith.constant dense<0.000000e+00> : vector<4x8x32xf32>
    %30 = tpu.matmul %27, %29, %cst_25 {dimension_numbers = #tpu.dot_dimension_numbers<[2], [1], [1], [2], [0, 0, 0, 1, 1, 2], [0], [0]>} : vector<4x8x8xf32>, vector<4x8x32xf32>, vector<4x8x32xf32> -> vector<4x8x32xf32>
    "tpu.trace_stop"() : () -> ()
    %31 = vector.extract_strided_slice %30 {offsets = [0, 0, 0], sizes = [1, 8, 32], strides = [1, 1, 1]} : vector<4x8x32xf32> to vector<1x8x32xf32>
    %32 = vector.shape_cast %31 : vector<1x8x32xf32> to vector<8x32xf32>
    %33 = vector.extract_strided_slice %30 {offsets = [1, 0, 0], sizes = [1, 8, 32], strides = [1, 1, 1]} : vector<4x8x32xf32> to vector<1x8x32xf32>
    %34 = vector.shape_cast %33 : vector<1x8x32xf32> to vector<8x32xf32>
    %35 = arith.addf %32, %34 : vector<8x32xf32>
    %36 = vector.extract_strided_slice %30 {offsets = [2, 0, 0], sizes = [1, 8, 32], strides = [1, 1, 1]} : vector<4x8x32xf32> to vector<1x8x32xf32>
    %37 = vector.shape_cast %36 : vector<1x8x32xf32> to vector<8x32xf32>
    %38 = arith.addf %35, %37 : vector<8x32xf32>
    %39 = vector.extract_strided_slice %30 {offsets = [3, 0, 0], sizes = [1, 8, 32], strides = [1, 1, 1]} : vector<4x8x32xf32> to vector<1x8x32xf32>
    %40 = vector.shape_cast %39 : vector<1x8x32xf32> to vector<8x32xf32>
    %41 = arith.addf %38, %40 : vector<8x32xf32>
    %c0_26 = arith.constant 0 : index
    %c0_27 = arith.constant 0 : index
    %c0_28 = arith.constant 0 : index
    %42 = vector.load %arg11[%c0_26, %c0_27, %c0_28] : memref<1x5x32xf32, #tpu.memory_space<vmem>>, vector<1x1x32xf32>
    %43 = vector.shape_cast %42 : vector<1x1x32xf32> to vector<1x32xf32>
    %c0_29 = arith.constant 0 : index
    %c1 = arith.constant 1 : index
    %c0_30 = arith.constant 0 : index
    %44 = vector.load %arg11[%c0_29, %c1, %c0_30] : memref<1x5x32xf32, #tpu.memory_space<vmem>>, vector<1x1x32xf32>
    %45 = vector.shape_cast %44 : vector<1x1x32xf32> to vector<1x32xf32>
    %c0_31 = arith.constant 0 : index
    %c2 = arith.constant 2 : index
    %c0_32 = arith.constant 0 : index
    %46 = vector.load %arg11[%c0_31, %c2, %c0_32] : memref<1x5x32xf32, #tpu.memory_space<vmem>>, vector<1x1x32xf32>
    %47 = vector.shape_cast %46 : vector<1x1x32xf32> to vector<1x32xf32>
    %c0_33 = arith.constant 0 : index
    %c3 = arith.constant 3 : index
    %c0_34 = arith.constant 0 : index
    %48 = vector.load %arg11[%c0_33, %c3, %c0_34] : memref<1x5x32xf32, #tpu.memory_space<vmem>>, vector<1x1x32xf32>
    %49 = vector.shape_cast %48 : vector<1x1x32xf32> to vector<1x32xf32>
    %c0_35 = arith.constant 0 : index
    %c4 = arith.constant 4 : index
    %c0_36 = arith.constant 0 : index
    %50 = vector.load %arg11[%c0_35, %c4, %c0_36] : memref<1x5x32xf32, #tpu.memory_space<vmem>>, vector<1x1x32xf32>
    %51 = vector.shape_cast %50 : vector<1x1x32xf32> to vector<1x32xf32>
    %52 = arith.addf %41, %4 : vector<8x32xf32>
    %cst_37 = arith.constant dense<0.000000e+00> : vector<8xf32>
    %53 = vector.multi_reduction <add>, %52, %cst_37 [1] : vector<8x32xf32> to vector<8xf32>
    %54 = vector.shape_cast %53 : vector<8xf32> to vector<8x1xf32>
    %cst_38 = arith.constant 3.200000e+01 : f32
    %55 = vector.broadcast %cst_38 : f32 to vector<8x1xf32>
    %56 = arith.divf %54, %55 : vector<8x1xf32>
    %57 = vector.broadcast %56 : vector<8x1xf32> to vector<8x32xf32>
    %58 = arith.subf %52, %57 : vector<8x32xf32>
    %59 = arith.mulf %58, %58 : vector<8x32xf32>
    %cst_39 = arith.constant dense<0.000000e+00> : vector<8xf32>
    %60 = vector.multi_reduction <add>, %59, %cst_39 [1] : vector<8x32xf32> to vector<8xf32>
    %61 = vector.shape_cast %60 : vector<8xf32> to vector<8x1xf32>
    %cst_40 = arith.constant 3.200000e+01 : f32
    %62 = vector.broadcast %cst_40 : f32 to vector<8x1xf32>
    %63 = arith.divf %61, %62 : vector<8x1xf32>
    %64 = vector.broadcast %56 : vector<8x1xf32> to vector<8x32xf32>
    %65 = arith.subf %52, %64 : vector<8x32xf32>
    %cst_41 = arith.constant 9.99999997E-7 : f32
    %66 = vector.broadcast %cst_41 : f32 to vector<8x1xf32>
    %67 = arith.addf %63, %66 : vector<8x1xf32>
    %68 = math.rsqrt %67 : vector<8x1xf32>
    %69 = vector.broadcast %68 : vector<8x1xf32> to vector<8x32xf32>
    %70 = arith.mulf %65, %69 : vector<8x32xf32>
    %71 = vector.broadcast %43 : vector<1x32xf32> to vector<8x32xf32>
    %72 = arith.mulf %70, %71 : vector<8x32xf32>
    %73 = vector.broadcast %45 : vector<1x32xf32> to vector<8x32xf32>
    %74 = arith.addf %72, %73 : vector<8x32xf32>
    %c0_42 = arith.constant 0 : index
    %c0_43 = arith.constant 0 : index
    %c0_44 = arith.constant 0 : index
    %75 = vector.load %arg8[%c0_42, %c0_43, %c0_44] : memref<1x32x64xf32, #tpu.memory_space<vmem>>, vector<1x32x64xf32>
    %76 = vector.shape_cast %75 : vector<1x32x64xf32> to vector<32x64xf32>
    %cst_45 = arith.constant dense<0.000000e+00> : vector<8x64xf32>
    %77 = tpu.matmul %74, %76, %cst_45 {dimension_numbers = #tpu.dot_dimension_numbers<[1], [0], [0], [1], [0, 0, 1, 1], [], []>} : vector<8x32xf32>, vector<32x64xf32>, vector<8x64xf32> -> vector<8x64xf32>
    %c0_46 = arith.constant 0 : index
    %c0_47 = arith.constant 0 : index
    %c0_48 = arith.constant 0 : index
    %78 = vector.load %arg9[%c0_46, %c0_47, %c0_48] : memref<1x1x64xf32, #tpu.memory_space<vmem>>, vector<1x1x64xf32>
    %79 = vector.shape_cast %78 : vector<1x1x64xf32> to vector<1x64xf32>
    %80 = vector.broadcast %79 : vector<1x64xf32> to vector<8x64xf32>
    %81 = arith.addf %77, %80 : vector<8x64xf32>
    %cst_49 = arith.constant 0.000000e+00 : f32
    %82 = vector.broadcast %cst_49 : f32 to vector<8x64xf32>
    %83 = arith.maximumf %81, %82 : vector<8x64xf32>
    %c0_50 = arith.constant 0 : index
    %c0_51 = arith.constant 0 : index
    %c0_52 = arith.constant 0 : index
    %84 = vector.load %arg10[%c0_50, %c0_51, %c0_52] : memref<1x64x32xf32, #tpu.memory_space<vmem>>, vector<1x64x32xf32>
    %85 = vector.shape_cast %84 : vector<1x64x32xf32> to vector<64x32xf32>
    %cst_53 = arith.constant dense<0.000000e+00> : vector<8x32xf32>
    %86 = tpu.matmul %83, %85, %cst_53 {dimension_numbers = #tpu.dot_dimension_numbers<[1], [0], [0], [1], [0, 0, 1, 1], [], []>} : vector<8x64xf32>, vector<64x32xf32>, vector<8x32xf32> -> vector<8x32xf32>
    %87 = vector.broadcast %51 : vector<1x32xf32> to vector<8x32xf32>
    %88 = arith.addf %86, %87 : vector<8x32xf32>
    %89 = arith.addf %88, %74 : vector<8x32xf32>
    %cst_54 = arith.constant dense<0.000000e+00> : vector<8xf32>
    %90 = vector.multi_reduction <add>, %89, %cst_54 [1] : vector<8x32xf32> to vector<8xf32>
    %91 = vector.shape_cast %90 : vector<8xf32> to vector<8x1xf32>
    %cst_55 = arith.constant 3.200000e+01 : f32
    %92 = vector.broadcast %cst_55 : f32 to vector<8x1xf32>
    %93 = arith.divf %91, %92 : vector<8x1xf32>
    %94 = vector.broadcast %93 : vector<8x1xf32> to vector<8x32xf32>
    %95 = arith.subf %89, %94 : vector<8x32xf32>
    %96 = arith.mulf %95, %95 : vector<8x32xf32>
    %cst_56 = arith.constant dense<0.000000e+00> : vector<8xf32>
    %97 = vector.multi_reduction <add>, %96, %cst_56 [1] : vector<8x32xf32> to vector<8xf32>
    %98 = vector.shape_cast %97 : vector<8xf32> to vector<8x1xf32>
    %cst_57 = arith.constant 3.200000e+01 : f32
    %99 = vector.broadcast %cst_57 : f32 to vector<8x1xf32>
    %100 = arith.divf %98, %99 : vector<8x1xf32>
    %101 = vector.broadcast %93 : vector<8x1xf32> to vector<8x32xf32>
    %102 = arith.subf %89, %101 : vector<8x32xf32>
    %cst_58 = arith.constant 9.99999997E-7 : f32
    %103 = vector.broadcast %cst_58 : f32 to vector<8x1xf32>
    %104 = arith.addf %100, %103 : vector<8x1xf32>
    %105 = math.rsqrt %104 : vector<8x1xf32>
    %106 = vector.broadcast %105 : vector<8x1xf32> to vector<8x32xf32>
    %107 = arith.mulf %102, %106 : vector<8x32xf32>
    %108 = vector.broadcast %47 : vector<1x32xf32> to vector<8x32xf32>
    %109 = arith.mulf %107, %108 : vector<8x32xf32>
    %110 = vector.broadcast %49 : vector<1x32xf32> to vector<8x32xf32>
    %111 = arith.addf %109, %110 : vector<8x32xf32>
    %112 = math.tanh %111 : vector<8x32xf32>
    %c0_59 = arith.constant 0 : index
    %c0_60 = arith.constant 0 : index
    %c0_61 = arith.constant 0 : index
    %113 = vector.load %arg12[%c0_59, %c0_60, %c0_61] : memref<1x8x32xf32, #tpu.memory_space<vmem>>, vector<1x8x32xf32>
    %114 = vector.shape_cast %113 : vector<1x8x32xf32> to vector<8x32xf32>
    %115 = vector.shape_cast %112 : vector<8x32xf32> to vector<1x8x32xf32>
    tpu.vector_store %arg12[%c0_59, %c0_60, %c0_61], %115 {strides = array<i32>} : memref<1x8x32xf32, #tpu.memory_space<vmem>>, vector<1x8x32xf32>,
    return
  }
  func.func @transform_0(%arg0: i32, %arg1: i32) -> (i32, i32, i32) {
    %c0_i32 = arith.constant 0 : i32
    %c0_i32_0 = arith.constant 0 : i32
    %c0_i32_1 = arith.constant 0 : i32
    return %arg0, %c0_i32, %c0_i32_0 : i32, i32, i32
  }
  func.func @transform_1(%arg0: i32, %arg1: i32) -> (i32, i32) {
    %c0_i32 = arith.constant 0 : i32
    %c0_i32_0 = arith.constant 0 : i32
    %c0_i32_1 = arith.constant 0 : i32
    return %c0_i32, %c0_i32_0 : i32, i32
  }
  func.func @transform_2(%arg0: i32, %arg1: i32) -> (i32, i32, i32, i32) {
    %c0_i32 = arith.constant 0 : i32
    %c0_i32_0 = arith.constant 0 : i32
    %c0_i32_1 = arith.constant 0 : i32
    %c0_i32_2 = arith.constant 0 : i32
    return %arg1, %c0_i32, %c0_i32_0, %c0_i32_1 : i32, i32, i32, i32
  }
  func.func @transform_3(%arg0: i32, %arg1: i32) -> (i32, i32, i32, i32) {
    %c0_i32 = arith.constant 0 : i32
    %c0_i32_0 = arith.constant 0 : i32
    %c0_i32_1 = arith.constant 0 : i32
    %c0_i32_2 = arith.constant 0 : i32
    return %arg1, %c0_i32, %c0_i32_0, %c0_i32_1 : i32, i32, i32, i32
  }
  func.func @transform_4(%arg0: i32, %arg1: i32) -> (i32, i32, i32, i32) {
    %c0_i32 = arith.constant 0 : i32
    %c0_i32_0 = arith.constant 0 : i32
    %c0_i32_1 = arith.constant 0 : i32
    %c0_i32_2 = arith.constant 0 : i32
    return %arg1, %c0_i32, %c0_i32_0, %c0_i32_1 : i32, i32, i32, i32
  }
  func.func @transform_5(%arg0: i32, %arg1: i32) -> (i32, i32, i32, i32) {
    %c0_i32 = arith.constant 0 : i32
    %c0_i32_0 = arith.constant 0 : i32
    %c0_i32_1 = arith.constant 0 : i32
    %c0_i32_2 = arith.constant 0 : i32
    return %arg1, %c0_i32, %c0_i32_0, %c0_i32_1 : i32, i32, i32, i32
  }
  func.func @transform_6(%arg0: i32, %arg1: i32) -> (i32, i32, i32) {
    %c0_i32 = arith.constant 0 : i32
    %c0_i32_0 = arith.constant 0 : i32
    %c0_i32_1 = arith.constant 0 : i32
    return %arg1, %c0_i32, %c0_i32_0 : i32, i32, i32
  }
  func.func @transform_7(%arg0: i32, %arg1: i32) -> (i32, i32, i32) {
    %c0_i32 = arith.constant 0 : i32
    %c0_i32_0 = arith.constant 0 : i32
    %c0_i32_1 = arith.constant 0 : i32
    return %arg1, %c0_i32, %c0_i32_0 : i32, i32, i32
  }
  func.func @transform_8(%arg0: i32, %arg1: i32) -> (i32, i32, i32) {
    %c0_i32 = arith.constant 0 : i32
    %c0_i32_0 = arith.constant 0 : i32
    %c0_i32_1 = arith.constant 0 : i32
    return %arg1, %c0_i32, %c0_i32_0 : i32, i32, i32
  }
  func.func @transform_9(%arg0: i32, %arg1: i32) -> (i32, i32, i32) {
    %c0_i32 = arith.constant 0 : i32
    %c0_i32_0 = arith.constant 0 : i32
    %c0_i32_1 = arith.constant 0 : i32
    return %arg1, %c0_i32, %c0_i32_0 : i32, i32, i32
  }
  func.func @transform_10(%arg0: i32, %arg1: i32) -> (i32, i32, i32) {
    %c0_i32 = arith.constant 0 : i32
    %c0_i32_0 = arith.constant 0 : i32
    %c0_i32_1 = arith.constant 0 : i32
    return %arg0, %c0_i32, %c0_i32_0 : i32, i32, i32
  }
}

</mosaic_0001>

<bundles_post_ra>
// kernel: tpu_custom_call.1
= control target key start
LH: loop header
LB: loop body
LE: loop exit
PB: predicated region body
PF: predicated region fallthrough
CT: control target
= control target key end

     0   :  { %s2154_s0 = inlined_call_operand.vmem [shape: f32[2,8,32], index: 0, kind: input, shape index: {}]   ;;  %s2155_s1 = inlined_call_operand.vmem [shape: f32[10,32], index: 1, kind: input, shape index: {}]   ;;  %s2156_s2 = inlined_call_operand.vmem [shape: f32[2,4,32,8], index: 2, kind: input, shape index: {}]   ;;  %s2157_s3 = inlined_call_operand.vmem [shape: f32[2,4,32,8], index: 3, kind: input, shape index: {}]   ;;  %s2158_s4 = inlined_call_operand.vmem [shape: f32[2,4,32,8], index: 4, kind: input, shape index: {}]   ;;  %s2159_s5 = inlined_call_operand.vmem [shape: f32[2,4,8,32], index: 5, kind: input, shape index: {}]   ;;  %s2160_s6 = inlined_call_operand.vmem [shape: f32[2,32,64], index: 6, kind: input, shape index: {}]   ;;  %s2161_s7 = inlined_call_operand.vmem [shape: f32[2,1,64], index: 7, kind: input, shape index: {}]   ;;  %s2162_s8 = inlined_call_operand.vmem [shape: f32[2,64,32], index: 8, kind: input, shape index: {}]   ;;  %s2163_s9 = inlined_call_operand.vmem [shape: f32[2,5,32], index: 9, kind: input, shape index: {}]   ;;  %s2164_s10 = inlined_call_operand.hbm [shape: f32[2,8,32], index: 10, kind: output, shape index: {}]  }
   0x1   :  { %2177 = sst [smem:[#allocation15_spill]] %s2154_s0 }
   0x2   :  { %2178 = sst [smem:[#allocation16_spill]] %s2156_s2 }
   0x3   :  { %2179 = sst [smem:[#allocation17_spill]] %s2157_s3 }
   0x4   :  { %2180 = sst [smem:[#allocation18_spill]] %s2158_s4 }
   0x5   :  { %2181 = sst [smem:[#allocation19_spill]] %s2159_s5 }
   0x6   :  { %2182 = sst [smem:[#allocation20_spill]] %s2164_s10 }
   0x7   :  { %15 = vsyncpa [#allocation3], 0 }
   0x8   :  { %17 = vsyncpa [#allocation3 + $0x1], 0  ;;  %s1830_s13 = smov 0   ;;  %s1832_s14 = smov 0  }
   0x9   :  { %s1834_s15 = smov 0   ;;  %s1836_s16 = smov 0  }
   0xa   :  { %s1838_s17 = smov 0   ;;  %s1840_s18 = smov 0  }
   0xb   :  { %s1842_s19 = smov 0   ;;  %s1844_s20 = smov 0  }
   0xc LB: > { %2183 = sst [smem:[#allocation5_spill]] %s1743_s13  ;;  %s1507_s21 = sadd.s32 4294967295, %s1771_s20   ;;  %s1771_s20 = sphi %s1844_s20, %s23_s20   ;;  %s1767_s19 = sphi %s1842_s19, %s2211_s19   ;;  %s1763_s18 = sphi %s1840_s18, %s2210_s18   ;;  %s1759_s17 = sphi %s1838_s17, %s2209_s17   ;;  %s1755_s16 = sphi %s1836_s16, %s2214_s16   ;;  %s1751_s15 = sphi %s1834_s15, %s2207_s15   ;;  %s1747_s14 = sphi %s1832_s14, %s2213_s14   ;;  %s1743_s13 = sphi %s1830_s13, %s2212_s13  }
   0xd   : > { %2184 = sst [smem:[#allocation6_spill]] %s1751_s15  ;;  %s1508_s22 = sadd.s32 4294967294, %s1771_s20  }
   0xe   : > { %2185 = sst [smem:[#allocation7_spill]] %s1763_s18  ;;  %s32_s23 = sadd.s32 1, %s1763_s18 }
   0xf   : > { %2186 = sst [smem:[#allocation8_spill]] %s1767_s19  ;;  %p33_p0 = scmp.ge.s32.totalorder %s32_s23, 2 }
  0x10   : > { %2187 = sst [smem:[#allocation9_spill]] %s1771_s20  ;;  %s35_s24 = sadd.s32 1, %s1767_s19 }
  0x11   : > { %p307_p1 = scmp.ne.s32.totalorder %s1751_s15, %s1747_s14  ;;  %p308_p2 = scmp.eq.s32.totalorder %s1507_s21, 3 }
  0x12   : > { %s2216_s23 = smov (%p33_p0, %s32_s23), 0  ;;  %s2218_s24 = smov (!%p33_p0, %s35_s24), %s1767_s19 }
  0x13   : > { %2188 = sst [smem:[#allocation10_spill]] %s2216_s23  ;;  %p1879_p3 = por %p308_p2, %p307_p1 }
  0x14   : > { %p313_p4 = scmp.ne.s32.totalorder %s1747_s14, %s1743_s13  ;;  %p37_p5 = scmp.ge.s32.totalorder %s2218_s24, 2 }
  0x15   : > { %s2189_s25 = scalar_select %p1879_p3, 1, 0 }
  0x16   : > { %p314_p6 = scmp.eq.s32.totalorder %s1508_s22, 3  ;;  %p1511_p7 = scmp.ge.s32.totalorder %s1771_s20, 1 }
  0x17   : > { %2190 = sst [smem:[#allocation11_spill]] %s2189_s25  ;;  %p403_p8 = scmp.lt.s32.totalorder %s1771_s20, 5 }
  0x18   : > { %s2220_s24 = smov (%p37_p5, %s2218_s24), 0  ;;  %p1889_p9 = por %p314_p6, %p313_p4 }
  0x19   : > { %2191 = sst [smem:[#allocation12_spill]] %s2220_s24  ;;  %p404_p10 = pnand %p1511_p7, %p403_p8 }
  0x1a   : > { %s2192_s26 = scalar_select %p1889_p9, 1, 0 }
  0x1b   : > { %s294_s27 = ssub.s32 %s1767_s19, %s2220_s24  ;;  %s297_s28 = sadd.s32 1, %s1751_s15 }
  0x1c   : > { %2193 = sst [smem:[#allocation13_spill]] %s2192_s26  ;;  %p295_p11 = scmp.eq.s32.totalorder %s294_s27, 0 }
  0x1d   : > { %407 = sbr.rel (%p404_p10) target bundleno = 1952 (0x7a0), region = 60  ;;  %s2168_s30 = sand.u32 (!%p404_p10), 1, %s1747_s14  }
  0x1e   : > { %s1897_s29 = scalar_select %p295_p11, %s1751_s15, %s297_s28  }
  0x1f   : > { %p477_p12 = scmp.lt.s32.totalorder (!%p404_p10), %s1759_s17, 1  ;;  %s1512_s11 = sshll.u32 (!%p404_p10), %s2168_s30, 3 }
  0x20   : > { %2194 = sst [smem:[#allocation14_spill]] %s1897_s29  ;;  %p481_p13 = scmp.lt.s32.totalorder (!%p404_p10), %s1755_s16, 1 }
  0x21   : > { %s2195_s0 = sld [smem:[#allocation15_spill]] (!%p404_p10)  ;;  %p1527_p0 = scmp.ne.s32.totalorder (!%p404_p10), %s1755_s16, 0 }
  0x22   : > { %s478_s12 = scalar_select %p477_p12, %s1759_s17, 1 }
  0x23   : > { %s1906_s21 = scalar_select %p481_p13, %s1755_s16, 1 }
  0x24   : > { %s1513_s22 = sshll.u32 %s478_s12, 3  ;;  %s2196_s2 = sld [smem:[#allocation16_spill]] }
  0x25   : > { %s1562_s23 = sshll.u32 %s1906_s21, 7  ;;  %s2197_s3 = sld [smem:[#allocation17_spill]] }
  0x26   : > { %s2198_s4 = sld [smem:[#allocation18_spill]]  ;;  %s1565_s12 = sshll.u32 %s1906_s21, 5 }
  0x27   : > { %s480_s24 = scalar_lea.vmem %s2195_s0, %s1513_s22  ;;  %s2199_s5 = sld [smem:[#allocation19_spill]] }
  0x28   : > { %s1936_s19 = scalar_lea.vmem %s2160_s6, %s1565_s12  ;;  %s508_s30 = scalar_lea.vmem %s2161_s7, %s1906_s21 }
  0x2a   : > { %s1915_s29 = scalar_lea.vmem %s2196_s2, %s1562_s23  ;;  %s1567_s2 = sshll.u32 %s1906_s21, 6 }
  0x2b   : > { %s1920_s26 = scalar_lea.vmem %s2197_s3, %s1562_s23  ;;  %s1946_s20 = scalar_lea.vmem %s2162_s8, %s1567_s2 }
  0x2c   : > { %s1925_s10 = scalar_lea.vmem %s2198_s4, %s1562_s23  ;;  %s1526_s23 = sshll.u32 %s1906_s21, 3 }
  0x2d   : > { %s1931_s22 = scalar_lea.vmem %s2199_s5, %s1565_s12  ;;  %s1952_s27 = scalar_lea.vmem %s2163_s9, %s1526_s23 }
  0x2e   : > { %s1954_s5 = scalar_lea.vmem [#allocation2], %s1512_s11  ;;  %521 = sbr.rel (%p1527_p0) target bundleno = 324 (0x144), region = 64 }
  0x33   : > { %v522_v0 = vld [vmem:[%s2155_s1] sm:$0xff]  ;;  %vm527_vm0 = vcmask 261120   ;;  %v1773_v4 = vmov 32.0   ;;  %v1641_v25 = vld [vmem:[%s2155_s1 + $0x8] ss:$0 sm:$0xff] }
  0x34   : > { %v525_v1 = vld [vmem:[%s480_s24] sm:$0xff]  ;;  %1643 = vrcp.f32 %v1773_v4  ;;  %v1642_v27 = vld [vmem:[%s2155_s1 + $0x9] ss:$0 sm:$0xff] }
  0x35   : > { %v526_v2 = vadd.f32 %v525_v1, %v522_v0 }
  0x37   : > { %v528_v3 = vsel %vm527_vm0, %v526_v2, 0.0 }
  0x38   : > { %529 = vadd.xlane.f32.xlu0 %v528_v3 }
  0x3a   : > { %v1644_v5 = vpop.eup %1643 }
  0x3b   : > { %v532_v6 = vmul.f32 32.0, %v1644_v5  ;;  %vm536_vm1 = vweird.f32 %v1644_v5 }
  0x3d   : > { %v533_v7 = vsub.f32 1.0, %v532_v6 }
  0x3f   : > { %v534_v8 = vmul.f32 %v1644_v5, %v533_v7 }
  0x41   : > { %v535_v9 = vadd.f32 %v1644_v5, %v534_v8 }
  0x43   : > { %v537_v10 = vsel %vm536_vm1, %v1644_v5, %v535_v9 }
  0xab   : > { %v530_v11 = vpop.xlane.xlu0 %529 }
  0xac   : > { %v538_v12 = vmul.f32 %v537_v10, %v530_v11 }
  0xae   : > { %v539_v13 = vsub.f32 %v526_v2, %v538_v12 }
  0xb0   : > { %v540_v14 = vmul.f32 %v539_v13, %v539_v13 }
  0xb2   : > { %v541_v15 = vsel %vm527_vm0, %v540_v14, 0.0 }
  0xb3   : > { %542 = vadd.xlane.f32.xlu0 %v541_v15 }
 0x126   : > { %v543_v16 = vpop.xlane.xlu0 %542 }
 0x127   : > { %v544_v17 = vmul.f32 %v543_v16, %v537_v10 }
 0x129   : > { %v545_v18 = vadd.f32 1e-06, %v544_v17 }
 0x12b   : > { %1645 = vrsqrt.f32 %v545_v18  ;;  %vm552_vm3 = vweird.f32 %v545_v18 }
 0x131   : > { %v1646_v19 = vpop.eup %1645 }
 0x132   : > { %v547_v20 = vmul.f32 %v1646_v19, %v545_v18  ;;  %vm553_vm2 = vweird.f32 %v1646_v19 }
 0x133   : > { %vm554_vm4 = vmor %vm552_vm3, %vm553_vm2 }
 0x134   : > { %v548_v21 = vmul.f32 %v1646_v19, %v547_v20 }
 0x136   : > { %v549_v22 = vmul.f32 0.5, %v548_v21 }
 0x138   : > { %v550_v23 = vsub.f32 1.5, %v549_v22 }
 0x13a   : > { %v551_v24 = vmul.f32 %v1646_v19, %v550_v23 }
 0x13c   : > { %v555_v26 = vsel %vm554_vm4, %v1646_v19, %v551_v24 }
 0x13d   : > { %v556_v28 = vmul.f32 %v555_v26, %v539_v13 }
 0x13f   : > { %v558_v29 = vmul.f32 %v1641_v25, %v556_v28 }
 0x141   : > { %v560_v30 = vadd.f32 %v1642_v27, %v558_v29 }
 0x143   : > { %561 = vst.msk [vmem:[%s1954_s5] sm:$0xff] %vm527_vm0, %v560_v30 }
 0x144 PF: > { %v566_v31 = vld [vmem:[%s1915_s29 + $0x18] sm:$0xff]  ;;  %v565_v33 = vld [vmem:[%s1915_s29 + $0x10] sm:$0xff]  ;;  %v564_v36 = vld [vmem:[%s1915_s29 + $0x8] sm:$0xff]  ;;  %vm579_vm5 = vcmask 261120   ;;  %vm855_vm6 = vcmask 64512   ;;  %vm1275_vm11 = vcmask 523264  }
 0x145   : > { %v570_v32 = vld [vmem:[%s1915_s29 + $0x38] sm:$0xff]  ;;  %595 = vmatpush.msra.mxu0 %v566_v31  ;;  %v569_v34 = vld [vmem:[%s1915_s29 + $0x30] sm:$0xff]  ;;  %v568_v37 = vld [vmem:[%s1915_s29 + $0x28] sm:$0xff]  ;;  %s1341_s18 = sshll.u32 %s1954_s5, 4  ;;  %s2202_s15 = sand.u32 1, %s1747_s14   ;;  %s1342_s18 = int_to_ptr.vmem [resolvable:$true] %s1341_s18 }
 0x146   : > { %615 = vmatpush.msra.mxu2 %v570_v32  ;;  %v670_v35 = vld [vmem:[%s1920_s26 + $0x38] sm:$0xff]  ;;  %v669_v39 = vld [vmem:[%s1920_s26 + $0x30] sm:$0xff]  ;;  %v563_v40 = vld [vmem:[%s1915_s29] sm:$0xff] }
 0x147   : > { %711 = vmatpush.msra.mxu1 %v670_v35  ;;  %v578_v38 = vld [vmem:[%s1915_s29 + $0x78] sm:$0xff]  ;;  %596 = vmatpush.msra.mxu0 %v565_v33  ;;  %v567_v41 = vld [vmem:[%s1915_s29 + $0x20] sm:$0xff]  ;;  %v577_v42 = vld [vmem:[%s1915_s29 + $0x70] sm:$0xff] }
 0x148   : > { %616 = vmatpush.msra.mxu2 %v569_v34  ;;  %655 = vmatpush.msra.mxu3 %v578_v38  ;;  %v668_v43 = vld [vmem:[%s1920_s26 + $0x28] sm:$0xff]  ;;  %v574_v45 = vld [vmem:[%s1915_s29 + $0x58] sm:$0xff]  ;;  %v667_v48 = vld [vmem:[%s1920_s26 + $0x20] sm:$0xff] }
 0x149   : > { %712 = vmatpush.msra.mxu1 %v669_v39  ;;  %597 = vmatpush.msra.mxu0 %v564_v36  ;;  %v666_v46 = vld [vmem:[%s1920_s26 + $0x18] sm:$0xff]  ;;  %v576_v47 = vld [vmem:[%s1915_s29 + $0x68] sm:$0xff]  ;;  %v573_v49 = vld [vmem:[%s1915_s29 + $0x50] sm:$0xff] }
 0x14a   : > { %617 = vmatpush.msra.mxu2 %v568_v37  ;;  %v1984_v44 = vld [vmem:[%s1954_s5] sm:$0xff]  ;;  %656 = vmatpush.msra.mxu3 %v577_v42  ;;  %v665_v50 = vld [vmem:[%s1920_s26 + $0x10] sm:$0xff]  ;;  %v678_v54 = vld [vmem:[%s1920_s26 + $0x78] sm:$0xff] }
 0x14b   : > { %713 = vmatpush.msra.mxu1 %v668_v43  ;;  %598 = vmatpush.msra.mxu0 %v563_v40  ;;  %v575_v51 = vld [vmem:[%s1915_s29 + $0x60] sm:$0xff]  ;;  %v572_v52 = vld [vmem:[%s1915_s29 + $0x48] sm:$0xff]  ;;  %v677_v57 = vld [vmem:[%s1920_s26 + $0x70] sm:$0xff] }
 0x14c   : > { %618 = vmatpush.msra.mxu2 %v567_v41  ;;  %1528 = vmatmul.msk.f32.vlgmr.msra.gmra.mxu0 %vm579_vm5, %v1984_v44  ;;  %v664_v53 = vld [vmem:[%s1920_s26 + $0x8] sm:$0xff]  ;;  %v571_v55 = vld [vmem:[%s1915_s29 + $0x40] sm:$0xff]  ;;  %v766_v58 = vld [vmem:[%s1925_s10 + $0x38] sm:$0xff]  ;;  %s1559_s29 = sshll.u32 %s1759_s17, 3 }
 0x14d   : > { %1529 = vmatmul.msk.f32.vlgmr.msra.gmra.mxu2 %vm579_vm5, %v1984_v44  ;;  %691 = vmatpush.msrb.mxu0 %v666_v46  ;;  %v663_v56 = vld [vmem:[%s1920_s26] sm:$0xff]  ;;  %v674_v59 = vld [vmem:[%s1920_s26 + $0x58] sm:$0xff]  ;;  %v765_v60 = vld [vmem:[%s1925_s10 + $0x30] sm:$0xff] }
 0x14e   : > { %635 = vmatpush.msrb.mxu2 %v574_v45  ;;  %657 = vmatpush.msra.mxu3 %v576_v47  ;;  %v676_v61 = vld [vmem:[%s1920_s26 + $0x68] sm:$0xff]  ;;  %v762_v62 = vld [vmem:[%s1925_s10 + $0x18] sm:$0xff]  ;;  %v673_v63 = vld [vmem:[%s1920_s26 + $0x50] sm:$0xff] }
 0x14f   : > { %714 = vmatpush.msra.mxu1 %v667_v48  ;;  %692 = vmatpush.msrb.mxu0 %v665_v50  ;;  %v764_v0 = vld [vmem:[%s1925_s10 + $0x28] sm:$0xff]  ;;  %v675_v1 = vld [vmem:[%s1920_s26 + $0x60] sm:$0xff]  ;;  %v761_v2 = vld [vmem:[%s1925_s10 + $0x10] sm:$0xff] }
 0x150   : > { %636 = vmatpush.msrb.mxu2 %v573_v49  ;;  %1533 = vmatmul.msk.f32.vlgmr.msra.gmra.mxu1 %vm579_vm5, %v1984_v44  ;;  %v672_v3 = vld [vmem:[%s1920_s26 + $0x48] sm:$0xff]  ;;  %v763_v4 = vld [vmem:[%s1925_s10 + $0x20] sm:$0xff]  ;;  %v774_v8 = vld [vmem:[%s1925_s10 + $0x78] sm:$0xff] }
 0x151   : > { %658 = vmatpush.msra.mxu3 %v575_v51  ;;  %693 = vmatpush.msrb.mxu0 %v664_v53  ;;  %v671_v5 = vld [vmem:[%s1920_s26 + $0x40] sm:$0xff]  ;;  %v760_v6 = vld [vmem:[%s1925_s10 + $0x8] sm:$0xff]  ;;  %v773_v9 = vld [vmem:[%s1925_s10 + $0x70] sm:$0xff] }
 0x152   : > { %637 = vmatpush.msrb.mxu2 %v572_v52  ;;  %1531 = vmatmul.msk.f32.vlgmr.msra.gmra.mxu3 %vm579_vm5, %v1984_v44  ;;  %v759_v7 = vld [vmem:[%s1925_s10] sm:$0xff]  ;;  %v770_v10 = vld [vmem:[%s1925_s10 + $0x58] sm:$0xff]  ;;  %v772_v11 = vld [vmem:[%s1925_s10 + $0x68] sm:$0xff] }
 0x153   : > { %751 = vmatpush.msrb.mxu3 %v678_v54  ;;  %807 = vmatpush.msrb.mxu1 %v766_v58  ;;  %v769_v12 = vld [vmem:[%s1925_s10 + $0x50] sm:$0xff]  ;;  %v771_v13 = vld [vmem:[%s1925_s10 + $0x60] sm:$0xff]  ;;  %v768_v14 = vld [vmem:[%s1925_s10 + $0x48] sm:$0xff] }
 0x154   : > { %638 = vmatpush.msrb.mxu2 %v571_v55  ;;  %694 = vmatpush.msrb.mxu0 %v663_v56  ;;  %v767_v15 = vld [vmem:[%s1925_s10 + $0x40] sm:$0xff] }
 0x155   : > { %1530 = vmatmul.msk.f32.vlgmr.msrb.gmra.mxu2 %vm579_vm5, %v1984_v44  ;;  %1532 = vmatmul.msk.f32.vlgmr.msrb.gmra.mxu0 %vm579_vm5, %v1984_v44 }
 0x156   : > { %752 = vmatpush.msrb.mxu3 %v677_v57  ;;  %731 = vmatpush.msra.mxu2 %v674_v59 }
 0x157   : > { %808 = vmatpush.msrb.mxu1 %v765_v60  ;;  %787 = vmatpush.msra.mxu0 %v762_v62 }
 0x158   : > { %753 = vmatpush.msrb.mxu3 %v676_v61  ;;  %732 = vmatpush.msra.mxu2 %v673_v63 }
 0x159   : > { %809 = vmatpush.msrb.mxu1 %v764_v0  ;;  %788 = vmatpush.msra.mxu0 %v761_v2 }
 0x15a   : > { %754 = vmatpush.msrb.mxu3 %v675_v1  ;;  %733 = vmatpush.msra.mxu2 %v672_v3 }
 0x15b   : > { %1535 = vmatmul.msk.f32.vlgmr.msrb.gmra.mxu3 %vm579_vm5, %v1984_v44  ;;  %810 = vmatpush.msrb.mxu1 %v763_v4 }
 0x15c   : > { %734 = vmatpush.msra.mxu2 %v671_v5  ;;  %1537 = vmatmul.msk.f32.vlgmr.msrb.gmra.mxu1 %vm579_vm5, %v1984_v44  ;;  %v1096_v5 = vld [vmem:[%s1931_s22] sm:$0xff] }
 0x15d   : > { %1534 = vmatmul.msk.f32.vlgmr.msra.gmra.mxu2 %vm579_vm5, %v1984_v44  ;;  %789 = vmatpush.msra.mxu0 %v760_v6  ;;  %v1097_v6 = vld [vmem:[%s1931_s22 + $0x8] sm:$0xff] }
 0x15e   : > { %847 = vmatpush.msra.mxu3 %v774_v8  ;;  %827 = vmatpush.msrb.mxu2 %v770_v10  ;;  %v1099_v8 = vld [vmem:[%s1931_s22 + $0x18] sm:$0xff] }
 0x15f   : > { %790 = vmatpush.msra.mxu0 %v759_v7  ;;  %v1098_v7 = vld [vmem:[%s1931_s22 + $0x10] sm:$0xff]  ;;  %s2201_s22 = sld [smem:[#allocation20_spill]] }
 0x160   : > { %1536 = vmatmul.msk.f32.vlgmr.msra.gmra.mxu0 %vm579_vm5, %v1984_v44  ;;  %848 = vmatpush.msra.mxu3 %v773_v9 }
 0x161   : > { %828 = vmatpush.msrb.mxu2 %v769_v12 }
 0x162   : > { %849 = vmatpush.msra.mxu3 %v772_v11 }
 0x163   : > { %829 = vmatpush.msrb.mxu2 %v768_v14 }
 0x164   : > { %850 = vmatpush.msra.mxu3 %v771_v13 }
 0x165   : > { %1539 = vmatmul.msk.f32.vlgmr.msra.gmra.mxu3 %vm579_vm5, %v1984_v44  ;;  %830 = vmatpush.msrb.mxu2 %v767_v15  ;;  %s1339_s28 = scalar_lea.hbm %s2201_s22, %s1559_s29  ;;  %s1697_s25 = scalar_lea.hbm %s2201_s22, 16 }
 0x166   : > { %1538 = vmatmul.msk.f32.vlgmr.msrb.gmra.mxu2 %vm579_vm5, %v1984_v44 }
 0x1c9   : > { %v600_v16 = vpop.f32.mrf.mxu0 }
 0x1cd   : > { %v716_v17 = vpop.f32.mrf.mxu1 }
 0x1ce   : > { %1542 = vmatpush.xpose.msk.msra.mxu1 %vm855_vm6, %v716_v17 }
 0x1d0   : > { %v620_v18 = vpop.f32.mrf.mxu2 }
 0x1d1   : > { %1543 = vmatmul.msk.f32.vlgmr.msra.gmra.mxu1 %vm855_vm6, %v620_v18 }
 0x1d2   : > { %v696_v19 = vpop.f32.mrf.mxu0 }
 0x1d3   : > { %1540 = vmatpush.xpose.msk.msrb.mxu0 %vm855_vm6, %v696_v19 }
 0x1d5   : > { %v660_v20 = vpop.f32.mrf.mxu3 }
 0x1d6   : > { %1541 = vmatmul.msk.f32.vlgmr.msrb.gmra.mxu0 %vm855_vm6, %v600_v16 }
 0x1d8   : > { %v640_v21 = vpop.f32.mrf.mxu2 }
 0x1d9   : > { %v812_v22 = vpop.f32.mrf.mxu1 }
 0x1da   : > { %1045 = vmatpush.msrb.mxu1 %v812_v22  ;;  %v1774_v22 = vmov 32.0  }
 0x1dc   : > { %1141 = vmatpush.msra.mxu1 %v1097_v6 }
 0x1dd   : > { %v792_v25 = vpop.f32.mrf.mxu0 }
 0x1de   : > { %v756_v23 = vpop.f32.mrf.mxu3  ;;  %1022 = vmatpush.msra.mxu0 %v792_v25 }
 0x1df   : > { %1546 = vmatpush.xpose.msk.msrb.mxu3 %vm855_vm6, %v756_v23 }
 0x1e0   : > { %v736_v24 = vpop.f32.mrf.mxu2  ;;  %1118 = vmatpush.msrb.mxu0 %v1096_v5 }
 0x1e1   : > { %1544 = vmatpush.xpose.msk.msra.mxu2 %vm855_vm6, %v736_v24 }
 0x1e2   : > { %1547 = vmatmul.msk.f32.vlgmr.msrb.gmra.mxu3 %vm855_vm6, %v660_v20 }
 0x1e4   : > { %1545 = vmatmul.msk.f32.vlgmr.msra.gmra.mxu2 %vm855_vm6, %v640_v21 }
 0x1e8   : > { %v852_v26 = vpop.f32.mrf.mxu3 }
 0x1e9   : > { %1091 = vmatpush.msra.mxu3 %v852_v26  ;;  %v832_v27 = vpop.f32.mrf.mxu2 }
 0x1ea   : > { %1068 = vmatpush.msrb.mxu2 %v832_v27 }
 0x1eb   : > { %1187 = vmatpush.msrb.mxu3 %v1099_v8 }
 0x1ec   : > { %1164 = vmatpush.msra.mxu2 %v1098_v7 }
 0x24e   : > { %v905_v30 = vpop.f32.mrf.mxu1 }
 0x24f   : > { %v963_v31 = vsel %vm855_vm6, %v905_v30, -inf }
 0x253   : > { %v879_v28 = vpop.f32.mrf.mxu0 }
 0x254   : > { %v960_v29 = vsel %vm855_vm6, %v879_v28, -inf }
 0x255   : > { %961 = vmax.xlane.f32.xlu1 %v960_v29 }
 0x25d   : > { %964 = vmax.xlane.f32.xlu1 %v963_v31 }
 0x265   : > { %v957_v34 = vpop.f32.mrf.mxu3 }
 0x266   : > { %v969_v35 = vsel %vm855_vm6, %v957_v34, -inf }
 0x267   : > { %v931_v32 = vpop.f32.mrf.mxu2 }
 0x268   : > { %v966_v33 = vsel %vm855_vm6, %v931_v32, -inf }
 0x269   : > { %967 = vmax.xlane.f32.xlu0 %v966_v33  ;;  %v1237_v33 = vld [vmem:[%s1936_s19 + $0x18] sm:$0xff] }
 0x271   : > { %970 = vmax.xlane.f32.xlu0 %v969_v35  ;;  %v1235_v35 = vld [vmem:[%s1936_s19 + $0x8] sm:$0xff] }
 0x2c8   : > { %v962_v36 = vpop.xlane.xlu1 %961 }
 0x2c9   : > { %v972_v37 = vsub.f32 %v879_v28, %v962_v36  ;;  %v1234_v36 = vld [vmem:[%s1936_s19] sm:$0xff] }
 0x2cb   : > { %v976_v38 = vmul.f32 1.442695, %v972_v37  ;;  %v1273_v37 = vld [vmem:[%s1946_s20 + $0x38] sm:$0xff] }
 0x2cd   : > { %1653 = vpow2.f32 %v976_v38  ;;  %v1272_v38 = vld [vmem:[%s1946_s20 + $0x30] sm:$0xff] }
 0x2d0   : > { %v965_v39 = vpop.xlane.xlu1 %964 }
 0x2d1   : > { %v973_v40 = vsub.f32 %v905_v30, %v965_v39  ;;  %v1271_v39 = vld [vmem:[%s1946_s20 + $0x28] sm:$0xff] }
 0x2d3   : > { %v1654_v41 = vpop.eup %1653  ;;  %v978_v42 = vmul.f32 1.442695, %v973_v40 }
 0x2d4   : > { %v984_v43 = vsel %vm855_vm6, %v1654_v41, 0.0 }
 0x2d5   : > { %1655 = vpow2.f32 %v978_v42  ;;  %985 = vadd.xlane.f32.xlu0 %v984_v43  ;;  %v1270_v42 = vld [vmem:[%s1946_s20 + $0x20] sm:$0xff] }
 0x2db   : > { %v1656_v45 = vpop.eup %1655 }
 0x2dc   : > { %v968_v46 = vpop.xlane.xlu0 %967  ;;  %v987_v47 = vsel %vm855_vm6, %v1656_v45, 0.0 }
 0x2dd   : > { %v974_v48 = vsub.f32 %v931_v32, %v968_v46  ;;  %988 = vadd.xlane.f32.xlu1 %v987_v47 }
 0x2df   : > { %v980_v49 = vmul.f32 1.442695, %v974_v48 }
 0x2e1   : > { %1657 = vpow2.f32 %v980_v49 }
 0x2e4   : > { %v971_v50 = vpop.xlane.xlu0 %970 }
 0x2e5   : > { %v975_v51 = vsub.f32 %v957_v34, %v971_v50  ;;  %v1236_v34 = vld [vmem:[%s1936_s19 + $0x10] sm:$0xff]  ;;  %s1343_s19 = sshll.u32 %s1339_s28, 4  ;;  %s1344_s19 = int_to_ptr.hbm [resolvable:$true] %s1343_s19 }
 0x2e6   : > { %s1691_s13 = sshra.s32 %s1344_s19, 4  ;;  %s1692_s13 = int_to_ptr.hbm [resolvable:$true] %s1691_s13 }
 0x2e7   : > { %v1658_v52 = vpop.eup %1657  ;;  %v982_v53 = vmul.f32 1.442695, %v975_v51  ;;  %p1698_p5 = scmp.lt.s32.totalorder %s1692_s13, %s2201_s22 }
 0x2e8   : > { %v990_v54 = vsel %vm855_vm6, %v1658_v52, 0.0 }
 0x2e9   : > { %1659 = vpow2.f32 %v982_v53  ;;  %991 = vadd.xlane.f32.xlu2 %v990_v54 }
 0x2ef   : > { %v1660_v55 = vpop.eup %1659 }
 0x2f0   : > { %v993_v56 = vsel %vm855_vm6, %v1660_v55, 0.0 }
 0x2f1   : > { %994 = vadd.xlane.f32.xlu2 %v993_v56 }
 0x348   : > { %v986_v57 = vpop.xlane.xlu0 %985 }
 0x349   : > { %1661 = vrcp.f32 %v986_v57 }
 0x34f   : > { %v1662_v58 = vpop.eup %1661 }
 0x350   : > { %v1000_v59 = vmul.f32 %v1662_v58, %v1654_v41  ;;  %v989_v60 = vpop.xlane.xlu1 %988  ;;  %v1268_v58 = vld [vmem:[%s1946_s20 + $0x10] sm:$0xff] }
 0x351   : > { %1663 = vrcp.f32 %v989_v60  ;;  %v1266_v60 = vld [vmem:[%s1946_s20] sm:$0xff] }
 0x352   : > { %1548 = vmatmul.msk.f32.vlgmr.msra.gmra.mxu0 %vm855_vm6, %v1000_v59  ;;  %v1267_v59 = vld [vmem:[%s1946_s20 + $0x8] sm:$0xff] }
 0x353   : > { %1257 = vmatpush.msra.mxu0 %v1237_v33 }
 0x355   : > { %1258 = vmatpush.msra.mxu0 %v1236_v34 }
 0x357   : > { %v1664_v61 = vpop.eup %1663  ;;  %1259 = vmatpush.msra.mxu0 %v1235_v35 }
 0x358   : > { %v1001_v62 = vmul.f32 %v1664_v61, %v1656_v45  ;;  %v1269_v45 = vld [vmem:[%s1946_s20 + $0x18] sm:$0xff]  ;;  %v1649_v61 = vld [vmem:[%s508_s30] ss:$0 sm:$0xff]  ;;  %s1329_s30 = scalar_lea.sflag [#allocation3], %s2202_s15  ;;  %s1693_s20 = scalar_lea.hbm %s1692_s13, 8 }
 0x359   : > { %1260 = vmatpush.msra.mxu0 %v1234_v36  ;;  %p1694_p1 = scmp.ne.s32.totalorder %s1692_s13, %s1693_s20  ;;  %p1699_p6 = scmp.lt.s32.totalorder %s1697_s25, %s1693_s20 }
 0x35a   : > { %1549 = vmatmul.msk.f32.vlgmr.msrb.gmra.mxu1 %vm855_vm6, %v1001_v62 }
 0x35b   : > { %1287 = vmatpush.msrb.mxu1 %v1273_v37  ;;  %p1695_p2 = pnand %p1694_p1, %p1879_p3  ;;  %p1700_p7 = por %p1699_p6, %p1698_p5 }
 0x35c   : > { %v992_v63 = vpop.xlane.xlu2 %991 }
 0x35d   : > { %1665 = vrcp.f32 %v992_v63  ;;  %1288 = vmatpush.msrb.mxu1 %v1272_v38  ;;  %p1696_p4 = pneg %p1695_p2 }
 0x35f   : > { %1289 = vmatpush.msrb.mxu1 %v1271_v39  ;;  %p1701_p8 = pnand %p1700_p7, %p1696_p4 }
 0x361   : > { %1290 = vmatpush.msrb.mxu1 %v1270_v42 }
 0x363   : > { %v1666_v0 = vpop.eup %1665  ;;  %1291 = vmatpush.msrb.mxu1 %v1269_v45 }
 0x364   : > { %v1002_v1 = vmul.f32 %v1666_v0, %v1658_v52  ;;  %v995_v2 = vpop.xlane.xlu2 %994  ;;  %v1647_v52 = vld [vmem:[%s1952_s27] ss:$0 sm:$0xff] }
 0x365   : > { %1667 = vrcp.f32 %v995_v2  ;;  %1292 = vmatpush.msrb.mxu1 %v1268_v58 }
 0x366   : > { %1550 = vmatmul.msk.f32.vlgmr.msrb.gmra.mxu2 %vm855_vm6, %v1002_v1  ;;  %1669 = vrcp.f32 %v1774_v22  ;;  %v1650_v1 = vld [vmem:[%s1952_s27 + $0x4] ss:$0 sm:$0xff]  ;;  %v1652_v22 = vld [vmem:[%s1952_s27 + $0x3] ss:$0 sm:$0xff] }
 0x367   : > { %1293 = vmatpush.msrb.mxu1 %v1267_v59 }
 0x369   : > { %1294 = vmatpush.msrb.mxu1 %v1266_v60 }
 0x36b   : > { %v1668_v3 = vpop.eup %1667 }
 0x36c   : > { %v1003_v4 = vmul.f32 %v1668_v3, %v1660_v55  ;;  %v1670_v23 = vpop.eup %1669  ;;  %v1648_v55 = vld [vmem:[%s1952_s27 + $0x1] ss:$0 sm:$0xff] }
 0x36d   : > { %v1205_v24 = vmul.f32 32.0, %v1670_v23  ;;  %vm1209_vm7 = vweird.f32 %v1670_v23 }
 0x36e   : > { %1551 = vmatmul.msk.f32.vlgmr.msra.gmra.mxu3 %vm855_vm6, %v1003_v4 }
 0x36f   : > { %v1206_v25 = vsub.f32 1.0, %v1205_v24 }
 0x371   : > { %v1207_v26 = vmul.f32 %v1670_v23, %v1206_v25 }
 0x373   : > { %v1208_v27 = vadd.f32 %v1670_v23, %v1207_v26 }
 0x375   : > { %v2075_v28 = vsel %vm1209_vm7, %v1670_v23, %v1208_v27 }
 0x3cf   : > { %v1024_v9 = vpop.f32.mrf.mxu0 }
 0x3d0   : > { %1552 = vmatmul.msk.f32.vlgmr.msrb.gmra.mxu0 %vm855_vm6, %v1024_v9 }
 0x3d7   : > { %v1047_v10 = vpop.f32.mrf.mxu1 }
 0x3d8   : > { %1553 = vmatmul.msk.f32.vlgmr.msra.gmra.mxu1 %vm855_vm6, %v1047_v10 }
 0x3e9   : > { %v1070_v11 = vpop.f32.mrf.mxu2 }
 0x3ea   : > { %1554 = vmatmul.msk.f32.vlgmr.msra.gmra.mxu2 %vm855_vm6, %v1070_v11 }
 0x3f1   : > { %v1093_v12 = vpop.f32.mrf.mxu3 }
 0x3f2   : > { %1555 = vmatmul.msk.f32.vlgmr.msrb.gmra.mxu3 %vm855_vm6, %v1093_v12 }
 0x44d   : > { %v1120_v14 = vpop.f32.mrf.mxu0 }
 0x455   : > { %v1143_v13 = vpop.f32.mrf.mxu1 }
 0x456   : > { %v1192_v16 = vadd.f32 %v1143_v13, %v1120_v14 }
 0x46d   : > { %v1166_v15 = vpop.f32.mrf.mxu2 }
 0x46e   : > { %v1193_v17 = vadd.f32 %v1192_v16, %v1166_v15 }
 0x475   : > { %v1189_v18 = vpop.f32.mrf.mxu3 }
 0x476   : > { %v1194_v19 = vadd.f32 %v1193_v17, %v1189_v18 }
 0x478   : > { %v1200_v20 = vadd.f32 %v1194_v19, %v1984_v44 }
 0x47a   : > { %v1201_v21 = vsel %vm579_vm5, %v1200_v20, 0.0 }
 0x47b   : > { %1202 = vadd.xlane.f32.xlu2 %v1201_v21 }
 0x4ee   : > { %v1203_v44 = vpop.xlane.xlu2 %1202 }
 0x4ef   : > { %v1211_v29 = vmul.f32 %v2075_v28, %v1203_v44 }
 0x4f1   : > { %v1212_v30 = vsub.f32 %v1200_v20, %v1211_v29  ;;  %v1651_v20 = vld [vmem:[%s1952_s27 + $0x2] ss:$0 sm:$0xff] }
 0x4f3   : > { %v1213_v31 = vmul.f32 %v1212_v30, %v1212_v30 }
 0x4f5   : > { %v1214_v32 = vsel %vm579_vm5, %v1213_v31, 0.0 }
 0x4f6   : > { %1215 = vadd.xlane.f32.xlu0 %v1214_v32 }
 0x569   : > { %v1216_v40 = vpop.xlane.xlu0 %1215 }
 0x56a   : > { %v1217_v41 = vmul.f32 %v1216_v40, %v2075_v28 }
 0x56c   : > { %v1218_v43 = vadd.f32 1e-06, %v1217_v41 }
 0x56e   : > { %1671 = vrsqrt.f32 %v1218_v43  ;;  %vm1225_vm9 = vweird.f32 %v1218_v43 }
 0x574   : > { %v1672_v46 = vpop.eup %1671 }
 0x575   : > { %v1220_v47 = vmul.f32 %v1672_v46, %v1218_v43  ;;  %vm1226_vm8 = vweird.f32 %v1672_v46 }
 0x576   : > { %vm1227_vm10 = vmor %vm1225_vm9, %vm1226_vm8 }
 0x577   : > { %v1221_v48 = vmul.f32 %v1672_v46, %v1220_v47 }
 0x579   : > { %v1222_v49 = vmul.f32 0.5, %v1221_v48 }
 0x57b   : > { %v1223_v50 = vsub.f32 1.5, %v1222_v49 }
 0x57d   : > { %v1224_v51 = vmul.f32 %v1672_v46, %v1223_v50 }
 0x57f   : > { %v1228_v53 = vsel %vm1227_vm10, %v1672_v46, %v1224_v51 }
 0x580   : > { %v1229_v54 = vmul.f32 %v1228_v53, %v1212_v30 }
 0x582   : > { %v1231_v56 = vmul.f32 %v1647_v52, %v1229_v54 }
 0x584   : > { %v1233_v57 = vadd.f32 %v1648_v55, %v1231_v56 }
 0x586   : > { %1556 = vmatmul.msk.f32.vlgmr.msra.gmra.mxu0 %vm579_vm5, %v1233_v57 }
 0x603   : > { %v1262_v62 = vpop.f32.mrf.mxu0 }
 0x604   : > { %v1263_v63 = vadd.f32 %v1649_v61, %v1262_v62 }
 0x606   : > { %v1265_v0 = vmax.f32 %v1263_v63, 0.0 }
 0x608   : > { %1557 = vmatmul.msk.f32.vlgmr.msrb.gmra.mxu1 %vm1275_vm11, %v1265_v0 }
 0x685   : > { %v1296_v2 = vpop.f32.mrf.mxu1 }
 0x686   : > { %v1297_v3 = vadd.f32 %v1650_v1, %v1296_v2 }
 0x688   : > { %v1299_v4 = vadd.f32 %v1297_v3, %v1233_v57 }
 0x68a   : > { %v1300_v5 = vsel %vm579_vm5, %v1299_v4, 0.0 }
 0x68b   : > { %1301 = vadd.xlane.f32.xlu1 %v1300_v5 }
 0x6fe   : > { %v1302_v6 = vpop.xlane.xlu1 %1301 }
 0x6ff   : > { %v1303_v7 = vmul.f32 %v1302_v6, %v2075_v28 }
 0x701   : > { %v1304_v8 = vsub.f32 %v1299_v4, %v1303_v7 }
 0x703   : > { %v1305_v9 = vmul.f32 %v1304_v8, %v1304_v8 }
 0x705   : > { %v1306_v10 = vsel %vm579_vm5, %v1305_v9, 0.0 }
 0x706   : > { %1307 = vadd.xlane.f32.xlu2 %v1306_v10 }
 0x779   : > { %v1308_v11 = vpop.xlane.xlu2 %1307 }
 0x77a   : > { %v1309_v12 = vmul.f32 %v1308_v11, %v2075_v28 }
 0x77c   : > { %v1310_v13 = vadd.f32 1e-06, %v1309_v12 }
 0x77e   : > { %1673 = vrsqrt.f32 %v1310_v13  ;;  %vm1317_vm13 = vweird.f32 %v1310_v13 }
 0x784   : > { %v1674_v14 = vpop.eup %1673 }
 0x785   : > { %v1312_v15 = vmul.f32 %v1674_v14, %v1310_v13  ;;  %vm1318_vm12 = vweird.f32 %v1674_v14 }
 0x786   : > { %vm1319_vm14 = vmor %vm1317_vm13, %vm1318_vm12 }
 0x787   : > { %v1313_v16 = vmul.f32 %v1674_v14, %v1312_v15 }
 0x789   : > { %v1314_v17 = vmul.f32 0.5, %v1313_v16 }
 0x78b   : > { %v1315_v18 = vsub.f32 1.5, %v1314_v17 }
 0x78d   : > { %v1316_v19 = vmul.f32 %v1674_v14, %v1315_v18 }
 0x78f   : > { %v1320_v21 = vsel %vm1319_vm14, %v1674_v14, %v1316_v19 }
 0x790   : > { %v1321_v23 = vmul.f32 %v1320_v21, %v1304_v8 }
 0x792   : > { %v1323_v24 = vmul.f32 %v1651_v20, %v1321_v23 }
 0x794   : > { %v1325_v25 = vadd.f32 %v1652_v22, %v1323_v24 }
 0x796   : > { %1675 = vtanh.f32 %v1325_v25 }
 0x79c   : > { %v1676_v26 = vpop.eup %1675 }
 0x79d   : > { %1327 = vst.msk [vmem:[%s1954_s5] sm:$0xff] %vm579_vm5, %v1676_v26 }
 0x79e   : > { %1704 = shalt.err (!%p1701_p8)
}
 0x79f   : > { %1568 = dma.vmem_to_hbm [thread:$0]  (%p1879_p3), %s1342_s18, 128, %s1344_s19, %s1329_s30  }
 0x7a0 PF: > { %s2203_s5 = sld [smem:[#allocation9_spill]] }
 0x7a1   : > { %s2204_s0 = sld [smem:[#allocation5_spill]] }
 0x7a6   : > { %p1574_p10 = scmp.ge.s32.totalorder %s2203_s5, 2 }
 0x7a7   : > { %s1355_s3 = sand.u32 1, %s2204_s0  }
 0x7a8   : > { %p1571_p11 = pnand %p1574_p10, %p1889_p9  ;;  %s1356_s4 = scalar_lea.sflag [#allocation3], %s1355_s3 }
 0x7aa   : > { %p1572_p12 = pneg %p1571_p11 }
 0x7ac   : > { %1738 = dma.done.wait (%p1572_p12), %s1356_s4, 128  }
 0x7ad   : > { %1740 = vsyncadd (%p1572_p12), %s1356_s4, 4294967168  ;;  %s23_s20 = sadd.s32 1, %s2203_s5   ;;  %s2206_s16 = sld [smem:[#allocation6_spill]] }
 0x7ae   : > { %p20_p13 = scmp.ge.s32.totalorder %s23_s20, 6   ;;  %s2207_s15 = sld [smem:[#allocation14_spill]] }
 0x7af   : > { %s2208_s10 = sld [smem:[#allocation7_spill]]  ;;  %s2212_s13 = smov %s1747_s14 }
 0x7b0   : > { %s2209_s17 = sld [smem:[#allocation8_spill]] }
 0x7b1   : > { %s2210_s18 = sld [smem:[#allocation10_spill]]  ;;  %22 = sbr.rel (!%p20_p13) target bundleno = 12 (0xc), region = 123 }
 0x7b2   : > { %s2211_s19 = sld [smem:[#allocation12_spill]] }
 0x7b3   : > { %s2213_s14 = smov %s2206_s16 }
 0x7b5   : > { %s2214_s16 = smov %s2208_s10 }
 0x7b6   :  { %1362 = vsyncpa [#allocation3], 1 }
 0x7b7   :  { %1364 = vsyncpa [#allocation3 + $0x1], 1 }

</bundles_post_ra>
